<compile_context>
chip_gen: v7x
topology: tpu7x:2x2x1
jax: 0.10.0
libtpu: 0.0.40
codegen_flags: <defaults>
</compile_context>

<pallas_src>
from functools import partial

import numpy as np
import jax
import jax.numpy as jnp
from jax.experimental import pallas as pl
from jax.experimental.pallas import tpu as pltpu

OFFSETS = np.array([(kz, ky, kx) for kz in range(3) for ky in range(3) for kx in range(3)],
                   dtype=np.int64)
K3 = len(OFFSETS)  # 27


def _round_up(v, m):
    return (v + m - 1) // m * m


# ----------------------------- Pallas kernels -----------------------------

def _matmul_bn_kernel(*refs, relu, res_mode):
    """K-tiled matmul, f32 accumulation directly in the output block, fused
    eval-mode BN (scale/shift) + optional residual + ReLU epilogue."""
    if res_mode == "none":
        x_ref, w_ref, s_ref, b_ref, o_ref = refs
        r_ref = None
    else:
        x_ref, w_ref, s_ref, b_ref, r_ref, o_ref = refs

    k = pl.program_id(1)

    @pl.when(k == 0)
    def _():
        o_ref[...] = jnp.zeros_like(o_ref)

    o_ref[...] += jnp.dot(x_ref[...], w_ref[...], preferred_element_type=jnp.float32)

    @pl.when(k == pl.num_programs(1) - 1)
    def _():
        y = o_ref[...] * s_ref[...] + b_ref[...]
        if res_mode == "add_then_relu":      # basic block: (conv+bn) + identity -> relu
            y = jnp.maximum(y + r_ref[...], 0.0)
        elif res_mode == "relu_then_add":    # up block: relu(conv+bn) + channel_reduction
            y = jnp.maximum(y, 0.0) + r_ref[...]
        elif relu:
            y = jnp.maximum(y, 0.0)
        o_ref[...] = y


@partial(jax.jit, static_argnames=("relu", "res_mode", "tm"))
def matmul_bn(x, w, scale, shift, residual, *, relu, res_mode, tm):
    """(Np, Kp)bf16 @ (Kp, Cp)bf16 with fused BN / residual / ReLU epilogue (f32 out).

    Grid is (M_tiles, K_tiles) with K innermost (reduction, 'arbitrary') and M
    'parallel' (megacore shardable).  Output block is the accumulator.
    """
    Np, Kp = x.shape
    _, Cp = w.shape
    assert Np % tm == 0 and Kp % 128 == 0

    tk = 512 if Kp % 512 == 0 else (256 if Kp % 256 == 0 else 128)
    grid = (Np // tm, Kp // tk)

    in_specs = [
        pl.BlockSpec((tm, tk), lambda i, k: (i, k)),
        pl.BlockSpec((tk, Cp), lambda i, k: (k, 0)),
        pl.BlockSpec((1, Cp), lambda i, k: (0, 0)),
        pl.BlockSpec((1, Cp), lambda i, k: (0, 0)),
    ]
    args = [x, w, scale, shift]
    if res_mode != "none":
        in_specs.append(pl.BlockSpec((tm, Cp), lambda i, k: (i, 0)))
        args.append(residual)

    flops = 2 * Np * Kp * Cp
    bytes_accessed = (Np * Kp * 2 + Kp * Cp * 2 + Np * Cp * 4
                      + (Np * Cp * 4 if res_mode != "none" else 0))

    return pl.pallas_call(
        partial(_matmul_bn_kernel, relu=relu, res_mode=res_mode),
        out_shape=jax.ShapeDtypeStruct((Np, Cp), jnp.float32),
        grid=grid,
        in_specs=in_specs,
        out_specs=pl.BlockSpec((tm, Cp), lambda i, k: (i, 0)),
        compiler_params=pltpu.CompilerParams(
            dimension_semantics=("parallel", "arbitrary"),
            vmem_limit_bytes=48 * 1024 * 1024,
        ),
        cost_estimate=pl.CostEstimate(flops=flops, transcendentals=0,
                                      bytes_accessed=bytes_accessed),
    )(*args)


def _add_kernel(a_ref, b_ref, o_ref, *, relu):
    y = a_ref[...] + b_ref[...]
    if relu:
        y = jnp.maximum(y, 0.0)
    o_ref[...] = y


@partial(jax.jit, static_argnames=("relu",))
def add_act(a, b, relu):
    """Row-tiled elementwise add (+ReLU).  Only used where fusion into the
    matmul epilogue is impossible (SE blocks)."""
    N, C = a.shape
    Cp = max(_round_up(C, 128), 128)
    TM = min(512, _round_up(N, 8))
    Np = _round_up(N, TM)
    ap = jnp.pad(a, ((0, Np - N), (0, Cp - C)))
    bp = jnp.pad(b, ((0, Np - N), (0, Cp - C)))
    out = pl.pallas_call(
        partial(_add_kernel, relu=relu),
        out_shape=jax.ShapeDtypeStruct((Np, Cp), jnp.float32),
        grid=(Np // TM,),
        in_specs=[pl.BlockSpec((TM, Cp), lambda i: (i, 0)),
                  pl.BlockSpec((TM, Cp), lambda i: (i, 0))],
        out_specs=pl.BlockSpec((TM, Cp), lambda i: (i, 0)),
        compiler_params=pltpu.CompilerParams(dimension_semantics=("parallel",)),
    )(ap, bp)
    return out[:N, :C]


# ------------------------ sparse conv via rulebooks ------------------------
# Rulebook (neighbor-index table) construction is data-dependent sparse indexing;
# it is built host-side with *vectorized* numpy (flat-key sort + searchsorted),
# no Python dict loops.

def _flat_keys(bzyx, dims):
    Z, Y, X = (int(d) for d in dims)
    b = bzyx[..., 0].astype(np.int64)
    z = bzyx[..., 1].astype(np.int64)
    y = bzyx[..., 2].astype(np.int64)
    x = bzyx[..., 3].astype(np.int64)
    return ((b * Z + z) * Y + y) * X + x


def _lookup(in_coords, query_bzyx, valid, dims):
    """valid query coords -> row index into in_coords, misses -> n_in (zero row)."""
    n_in = in_coords.shape[0]
    tkeys = _flat_keys(in_coords.astype(np.int64), dims)
    qkeys = _flat_keys(query_bzyx.astype(np.int64), dims)
    order = np.argsort(tkeys, kind="stable")
    skeys = tkeys[order]
    pos = np.clip(np.searchsorted(skeys, qkeys), 0, n_in - 1)
    hit = valid & (skeys[pos] == qkeys)
    return np.where(hit, order[pos], n_in).astype(np.int32)


def subm_table(coords, dims):
    """SubMConv3d (k=3, pad=1, stride=1): input coord = out coord + k - 1."""
    n = coords.shape[0]
    c = coords.astype(np.int64)
    nbr_zyx = c[:, None, 1:4] + (OFFSETS[None] - 1)                       # (n, 27, 3)
    dims_a = np.asarray(dims, dtype=np.int64)
    valid = np.all((nbr_zyx >= 0) & (nbr_zyx < dims_a), axis=-1)
    q = np.concatenate([np.broadcast_to(c[:, None, 0:1], (n, K3, 1)), nbr_zyx], axis=-1)
    idx = _lookup(coords, q.reshape(-1, 4), valid.reshape(-1), dims)
    return jnp.asarray(idx.reshape(n, K3))


def spconv_out_coords(coords, out_shape):
    """Active output sites of SparseConv3d(k=3, stride=2, pad=1)."""
    c = coords.astype(np.int64)
    n = c.shape[0]
    t = c[:, None, 1:4] + 1 - OFFSETS[None]                               # (n, 27, 3)
    q, r = np.divmod(t, 2)
    dims_a = np.asarray(out_shape, dtype=np.int64)
    ok = np.all(r == 0, axis=-1) & np.all((q >= 0) & (q < dims_a), axis=-1)
    b = np.broadcast_to(c[:, None, 0:1], (n, K3, 1))
    outs = np.concatenate([b, q], axis=-1).reshape(-1, 4)[ok.reshape(-1)]
    return np.unique(outs, axis=0).astype(np.int32)


def spconv_table(out_coords, in_coords, in_dims):
    """SparseConv3d(k=3, stride=2, pad=1): input coord = 2*out - 1 + k."""
    n = out_coords.shape[0]
    oc = out_coords.astype(np.int64)
    nbr_zyx = 2 * oc[:, None, 1:4] - 1 + OFFSETS[None]
    dims_a = np.asarray(in_dims, dtype=np.int64)
    valid = np.all((nbr_zyx >= 0) & (nbr_zyx < dims_a), axis=-1)
    q = np.concatenate([np.broadcast_to(oc[:, None, 0:1], (n, K3, 1)), nbr_zyx], axis=-1)
    idx = _lookup(in_coords, q.reshape(-1, 4), valid.reshape(-1), in_dims)
    return jnp.asarray(idx.reshape(n, K3))


def inverse_table(out_coords, in_coords, in_dims):
    """SparseInverseConv3d: output sites are the pre-downsample sites; geometry is
    the transpose of spconv_table (in coord c with 2*c - 1 + k == out coord)."""
    # TODO(synk): spconv flips the kernel index when reusing the paired rulebook;
    # here weights are indexed by the forward kernel position (a pure permutation
    # of the synthetic weights).
    n = out_coords.shape[0]
    oc = out_coords.astype(np.int64)
    t = oc[:, None, 1:4] + 1 - OFFSETS[None]
    q, r = np.divmod(t, 2)
    dims_a = np.asarray(in_dims, dtype=np.int64)
    valid = np.all(r == 0, axis=-1) & np.all((q >= 0) & (q < dims_a), axis=-1)
    qq = np.concatenate([np.broadcast_to(oc[:, None, 0:1], (n, K3, 1)), q], axis=-1)
    idx = _lookup(in_coords, qq.reshape(-1, 4), valid.reshape(-1), in_dims)
    return jnp.asarray(idx.reshape(n, K3))


def sparse_conv_bn_act(features, nbr_idx, p, relu, residual=None, res_mode="none"):
    """gather (im2col over 27 neighbors, missing -> zero row, bf16) + Pallas
    matmul with fused BN / residual / ReLU."""
    n_out = nbr_idx.shape[0]
    n_in, cin = features.shape
    K = K3 * cin
    Kp, Cp = p["wp"].shape

    TM = min(256, _round_up(n_out, 8))
    Np = _round_up(n_out, TM)

    nbr_p = jnp.asarray(nbr_idx)
    if Np > n_out:   # pad rulebook rows with the "missing" index -> zero feature row
        nbr_p = jnp.concatenate(
            [nbr_p, jnp.full((Np - n_out, K3), n_in, jnp.int32)], axis=0)

    # TODO(synk): move this gather inside the Pallas kernel (SMEM-prefetched
    # rulebook + per-offset accumulate) to kill the 27x im2col HBM blow-up.
    xtab = jnp.concatenate([features.astype(jnp.bfloat16),
                            jnp.zeros((1, cin), jnp.bfloat16)], axis=0)
    g = xtab[nbr_p].reshape(Np, K)
    if Kp > K:
        g = jnp.pad(g, ((0, 0), (0, Kp - K)))

    res_p = None
    if res_mode != "none":
        res_p = jnp.pad(residual.astype(jnp.float32),
                        ((0, Np - n_out), (0, Cp - residual.shape[1])))

    out = matmul_bn(g, p["wp"], p["sp"], p["bp"], res_p,
                    relu=relu, res_mode=res_mode, tm=TM)
    return out[:n_out, :p["cout"]]


# ------------------------------ parameters --------------------------------

class KeyGen:
    def __init__(self, seed):
        self._key = jax.random.PRNGKey(seed)

    def __call__(self):
        self._key, sub = jax.random.split(self._key)
        return sub


def make_conv_bn(kg, cin, cout, bias=True, eps=1e-3):
    """Weights are padded to (Kp, Cp) and cast to bf16 ONCE here; eval-mode
    BatchNorm1d(eps=1e-3) + conv bias are folded into per-channel scale/shift."""
    K = K3 * cin
    Kp = _round_up(K, 128)
    Cp = _round_up(cout, 128)
    w = jax.random.normal(kg(), (K3, cin, cout), jnp.float32) / np.sqrt(K)
    b = (jax.random.normal(kg(), (cout,), jnp.float32) * 0.02
         if bias else jnp.zeros((cout,), jnp.float32))
    gamma = jnp.ones((cout,), jnp.float32)
    beta = jnp.zeros((cout,), jnp.float32)
    mean = jnp.zeros((cout,), jnp.float32)
    var = jnp.ones((cout,), jnp.float32)
    scale = gamma / jnp.sqrt(var + eps)
    shift = beta + (b - mean) * scale
    wp = (jnp.zeros((Kp, Cp), jnp.float32)
          .at[:K, :cout].set(w.reshape(K, cout)).astype(jnp.bfloat16))
    sp = jnp.zeros((1, Cp), jnp.float32).at[0, :cout].set(scale)
    bp = jnp.zeros((1, Cp), jnp.float32).at[0, :cout].set(shift)
    return {"wp": wp, "sp": sp, "bp": bp, "cout": cout}


def make_basic_block(kg, c, with_se=False):
    p = {"conv1": make_conv_bn(kg, c, c, bias=True),
         "conv2": make_conv_bn(kg, c, c, bias=True)}
    if with_se:
        r = c // 16
        p["se_w1"] = jax.random.normal(kg(), (c, r), jnp.float32) / np.sqrt(c)
        p["se_w2"] = jax.random.normal(kg(), (r, c), jnp.float32) / np.sqrt(r)
    return p


def make_upblock(kg, inplanes, planes):
    return {"transform": make_basic_block(kg, inplanes),
            "bottleneck": make_conv_bn(kg, 2 * inplanes, inplanes, bias=False),
            "out": make_conv_bn(kg, inplanes, planes, bias=False)}


def make_params(kg, input_channels, output_channels):
    P = {}
    P["conv_input"] = make_conv_bn(kg, input_channels, 64, bias=False)
    P["conv1"] = [make_basic_block(kg, 64), make_basic_block(kg, 64)]
    P["conv2"] = {"down": make_conv_bn(kg, 64, 128, bias=False),
                  "blocks": [make_basic_block(kg, 128), make_basic_block(kg, 128)]}
    P["conv3"] = {"down": make_conv_bn(kg, 128, 256, bias=False),
                  "blocks": [make_basic_block(kg, 256),
                             make_basic_block(kg, 256, with_se=True)]}
    P["conv4"] = {"down": make_conv_bn(kg, 256, 512, bias=False),
                  "blocks": [make_basic_block(kg, 512),
                             make_basic_block(kg, 512, with_se=True)]}
    P["up4"] = make_upblock(kg, 512, 256)
    P["up3"] = make_upblock(kg, 256, 128)
    P["up2"] = make_upblock(kg, 128, 64)
    P["up1"] = make_upblock(kg, 64, output_channels)
    return P


# ------------------------------ module fwd ---------------------------------

def se_layer(feats, batch_idx, w1, w2, batch_size):
    # TODO(synk): FlattenSELayer source not included in the reference snippet;
    # standard SE (per-batch mean pool -> FC -> ReLU -> FC -> sigmoid -> scale) used.
    sums = jax.ops.segment_sum(feats, batch_idx, num_segments=batch_size)
    cnts = jax.ops.segment_sum(jnp.ones((feats.shape[0], 1), feats.dtype),
                               batch_idx, num_segments=batch_size)
    mean = sums / jnp.maximum(cnts, 1.0)
    gate = jax.nn.sigmoid(jnp.maximum(mean @ w1, 0.0) @ w2)   # tiny glue matmul
    return feats * gate[batch_idx]


def basic_block(p, feats, nbr, batch_idx=None, batch_size=None):
    identity = feats
    h = sparse_conv_bn_act(feats, nbr, p["conv1"], relu=True)
    if "se_w1" in p:
        h = sparse_conv_bn_act(h, nbr, p["conv2"], relu=False)
        h = se_layer(h, batch_idx, p["se_w1"], p["se_w2"], batch_size)
        return add_act(h, identity, relu=True)
    # residual add + ReLU fused into the conv2 matmul epilogue
    return sparse_conv_bn_act(h, nbr, p["conv2"], relu=False,
                              residual=identity, res_mode="add_then_relu")


def up_block(p, feat_bottom, feat_lateral, nbr_subm, nbr_out):
    x_trans = basic_block(p["transform"], feat_lateral, nbr_subm)
    x_cat = jnp.concatenate([feat_bottom, x_trans], axis=1)
    c = p["bottleneck"]["cout"]
    x_red = x_cat.reshape(x_cat.shape[0], c, -1).sum(axis=2)   # channel_reduction
    # relu(bottleneck conv + BN) + channel_reduction, fused in the epilogue
    x = sparse_conv_bn_act(x_cat, nbr_subm, p["bottleneck"], relu=True,
                           residual=x_red, res_mode="relu_then_add")
    return sparse_conv_bn_act(x, nbr_out, p["out"], relu=True)


def sparse_unet_forward(P, voxel_features, voxel_coords, batch_size, grid_size):
    sparse_shape = list(grid_size[::-1])      # [Z, Y, X]
    c1 = np.asarray(voxel_coords, dtype=np.int32)
    shapes = [sparse_shape]
    for _ in range(3):
        shapes.append([(d - 1) // 2 + 1 for d in shapes[-1]])

    nbr1 = subm_table(c1, shapes[0])
    c2 = spconv_out_coords(c1, shapes[1])
    nbr_d2 = spconv_table(c2, c1, shapes[0]); nbr2 = subm_table(c2, shapes[1])
    c3 = spconv_out_coords(c2, shapes[2])
    nbr_d3 = spconv_table(c3, c2, shapes[1]); nbr3 = subm_table(c3, shapes[2])
    c4 = spconv_out_coords(c3, shapes[3])
    nbr_d4 = spconv_table(c4, c3, shapes[2]); nbr4 = subm_table(c4, shapes[3])
    inv4 = inverse_table(c3, c4, shapes[3])
    inv3 = inverse_table(c2, c3, shapes[2])
    inv2 = inverse_table(c1, c2, shapes[1])
    b3 = jnp.asarray(c3[:, 0]); b4 = jnp.asarray(c4[:, 0])

    feats = jnp.asarray(voxel_features, jnp.float32)

    x = sparse_conv_bn_act(feats, nbr1, P["conv_input"], relu=True)
    x1 = basic_block(P["conv1"][0], x, nbr1)
    x1 = basic_block(P["conv1"][1], x1, nbr1)

    x2 = sparse_conv_bn_act(x1, nbr_d2, P["conv2"]["down"], relu=True)
    x2 = basic_block(P["conv2"]["blocks"][0], x2, nbr2)
    x2 = basic_block(P["conv2"]["blocks"][1], x2, nbr2)

    x3 = sparse_conv_bn_act(x2, nbr_d3, P["conv3"]["down"], relu=True)
    x3 = basic_block(P["conv3"]["blocks"][0], x3, nbr3)
    x3 = basic_block(P["conv3"]["blocks"][1], x3, nbr3, b3, batch_size)

    x4 = sparse_conv_bn_act(x3, nbr_d4, P["conv4"]["down"], relu=True)
    x4 = basic_block(P["conv4"]["blocks"][0], x4, nbr4)
    x4 = basic_block(P["conv4"]["blocks"][1], x4, nbr4, b4, batch_size)

    aux_voxel_features, aux_voxel_coords = x4, c4

    u4 = up_block(P["up4"], x4, x4, nbr4, inv4)   # -> coords of level 3
    u3 = up_block(P["up3"], u4, x3, nbr3, inv3)   # -> coords of level 2
    u2 = up_block(P["up2"], u3, x2, nbr2, inv2)   # -> coords of level 1
    u1 = up_block(P["up1"], u2, x1, nbr1, nbr1)   # subm, stays at level 1

    return {"voxel_features": u1, "voxel_coords": c1,
            "aux_voxel_features": aux_voxel_features,
            "aux_voxel_coords": aux_voxel_coords}


# ---------------------------------- main -----------------------------------

if __name__ == "__main__":
    input_channels, output_channels = 4, 16
    grid_size = [16, 16, 8]                 # [X, Y, Z] -> sparse_shape [8, 16, 16]
    batch_size, per_batch = 2, 24
    Z, Y, X = grid_size[::-1]

    key = jax.random.PRNGKey(0)
    kc0, kc1, kf = jax.random.split(key, 3)
    coord_keys = [kc0, kc1]
    rows = []
    for b in range(batch_size):
        flat = np.asarray(jax.random.choice(coord_keys[b], int(Z * Y * X),
                                            shape=(per_batch,), replace=False))
        z, r = np.divmod(flat, Y * X)
        y, x = np.divmod(r, X)
        rows.append(np.stack([np.full(per_batch, b), z, y, x], axis=1))
    voxel_coords = np.concatenate(rows).astype(np.int32)          # (48, 4)
    voxel_features = jax.random.normal(kf, (voxel_coords.shape[0], input_channels),
                                       jnp.float32)               # (48, 4)

    params = make_params(KeyGen(42), input_channels, output_channels)
    out = sparse_unet_forward(params, voxel_features, voxel_coords,
                              batch_size, grid_size)
    jax.block_until_ready(out["voxel_features"])
    jax.block_until_ready(out["aux_voxel_features"])

    assert out["voxel_features"].shape == (voxel_coords.shape[0], output_channels)
    assert out["aux_voxel_features"].shape[1] == 512
    print("KERNEL_OK")
</pallas_src>

<mosaic_0001>
module attributes {stable_mosaic.version = 11 : i64} {
  func.func @_matmul_bn_kernel(%arg0: i32, %arg1: i32, %arg2: memref<48x128xbf16, #tpu.memory_space<vmem>>, %arg3: memref<128x128xbf16, #tpu.memory_space<vmem>>, %arg4: memref<1x128xf32, #tpu.memory_space<vmem>>, %arg5: memref<1x128xf32, #tpu.memory_space<vmem>>, %arg6: memref<48x128xf32, #tpu.memory_space<vmem>>) attributes {dimension_semantics = [#tpu.dimension_semantics<parallel>, #tpu.dimension_semantics<arbitrary>], iteration_bounds = array<i64: 1, 1>, scalar_prefetch = 0 : i64, scratch_operands = 0 : i64, tpu.core_type = #tpu.core_type<tc>, window_params = [{transform_indices = @transform_0, window_bounds = array<i64: 48, 128>}, {transform_indices = @transform_1, window_bounds = array<i64: 128, 128>}, {pipeline_mode = #tpu.pipeline_mode<synchronous>, transform_indices = @transform_2, window_bounds = array<i64: 1, 128>}, {pipeline_mode = #tpu.pipeline_mode<synchronous>, transform_indices = @transform_3, window_bounds = array<i64: 1, 128>}, {transform_indices = @transform_4, window_bounds = array<i64: 48, 128>}]} {
    %c0_i32 = arith.constant 0 : i32
    %0 = arith.cmpi eq, %arg1, %c0_i32 : i32
    %1 = arith.extui %0 : i1 to i32
    %c0_i32_0 = arith.constant 0 : i32
    %2 = arith.cmpi ne, %1, %c0_i32_0 : i32
    scf.if %2 {
      %cst_10 = arith.constant 0.000000e+00 : f32
      %12 = vector.broadcast %cst_10 : f32 to vector<48x128xf32>
      %c0_11 = arith.constant 0 : index
      %c0_12 = arith.constant 0 : index
      %13 = vector.load %arg6[%c0_11, %c0_12] : memref<48x128xf32, #tpu.memory_space<vmem>>, vector<48x128xf32>
      tpu.vector_store %arg6[%c0_11, %c0_12], %12 {strides = array<i32>} : memref<48x128xf32, #tpu.memory_space<vmem>>, vector<48x128xf32>,
    } else {
    }
    %c0 = arith.constant 0 : index
    %c0_1 = arith.constant 0 : index
    %3 = vector.load %arg6[%c0, %c0_1] : memref<48x128xf32, #tpu.memory_space<vmem>>, vector<48x128xf32>
    %c0_2 = arith.constant 0 : index
    %c0_3 = arith.constant 0 : index
    %4 = vector.load %arg2[%c0_2, %c0_3] : memref<48x128xbf16, #tpu.memory_space<vmem>>, vector<48x128xbf16>
    %c0_4 = arith.constant 0 : index
    %c0_5 = arith.constant 0 : index
    %5 = vector.load %arg3[%c0_4, %c0_5] : memref<128x128xbf16, #tpu.memory_space<vmem>>, vector<128x128xbf16>
    %cst = arith.constant dense<0.000000e+00> : vector<48x128xf32>
    %6 = tpu.matmul %4, %5, %cst {dimension_numbers = #tpu.dot_dimension_numbers<[1], [0], [0], [1], [0, 0, 1, 1], [], []>} : vector<48x128xbf16>, vector<128x128xbf16>, vector<48x128xf32> -> vector<48x128xf32>
    %7 = arith.addf %3, %6 : vector<48x128xf32>
    %c0_6 = arith.constant 0 : index
    %c0_7 = arith.constant 0 : index
    %8 = vector.load %arg6[%c0_6, %c0_7] : memref<48x128xf32, #tpu.memory_space<vmem>>, vector<48x128xf32>
    tpu.vector_store %arg6[%c0_6, %c0_7], %7 {strides = array<i32>} : memref<48x128xf32, #tpu.memory_space<vmem>>, vector<48x128xf32>,
    %c0_i32_8 = arith.constant 0 : i32
    %9 = arith.cmpi eq, %arg1, %c0_i32_8 : i32
    %10 = arith.extui %9 : i1 to i32
    %c0_i32_9 = arith.constant 0 : i32
    %11 = arith.cmpi ne, %10, %c0_i32_9 : i32
    scf.if %11 {
      %c0_10 = arith.constant 0 : index
      %c0_11 = arith.constant 0 : index
      %12 = vector.load %arg6[%c0_10, %c0_11] : memref<48x128xf32, #tpu.memory_space<vmem>>, vector<48x128xf32>
      %c0_12 = arith.constant 0 : index
      %c0_13 = arith.constant 0 : index
      %13 = vector.load %arg4[%c0_12, %c0_13] : memref<1x128xf32, #tpu.memory_space<vmem>>, vector<1x128xf32>
      %14 = vector.broadcast %13 : vector<1x128xf32> to vector<48x128xf32>
      %15 = arith.mulf %12, %14 : vector<48x128xf32>
      %c0_14 = arith.constant 0 : index
      %c0_15 = arith.constant 0 : index
      %16 = vector.load %arg5[%c0_14, %c0_15] : memref<1x128xf32, #tpu.memory_space<vmem>>, vector<1x128xf32>
      %17 = vector.broadcast %16 : vector<1x128xf32> to vector<48x128xf32>
      %18 = arith.addf %15, %17 : vector<48x128xf32>
      %cst_16 = arith.constant 0.000000e+00 : f32
      %19 = vector.broadcast %cst_16 : f32 to vector<48x128xf32>
      %20 = arith.maximumf %18, %19 : vector<48x128xf32>
      %c0_17 = arith.constant 0 : index
      %c0_18 = arith.constant 0 : index
      %21 = vector.load %arg6[%c0_17, %c0_18] : memref<48x128xf32, #tpu.memory_space<vmem>>, vector<48x128xf32>
      tpu.vector_store %arg6[%c0_17, %c0_18], %20 {strides = array<i32>} : memref<48x128xf32, #tpu.memory_space<vmem>>, vector<48x128xf32>,
    } else {
    }
    return
  }
  func.func @transform_0(%arg0: i32, %arg1: i32) -> (i32, i32) {
    %c0_i32 = arith.constant 0 : i32
    return %arg0, %arg1 : i32, i32
  }
  func.func @transform_1(%arg0: i32, %arg1: i32) -> (i32, i32) {
    %c0_i32 = arith.constant 0 : i32
    %c0_i32_0 = arith.constant 0 : i32
    return %arg1, %c0_i32 : i32, i32
  }
  func.func @transform_2(%arg0: i32, %arg1: i32) -> (i32, i32) {
    %c0_i32 = arith.constant 0 : i32
    %c0_i32_0 = arith.constant 0 : i32
    %c0_i32_1 = arith.constant 0 : i32
    return %c0_i32, %c0_i32_0 : i32, i32
  }
  func.func @transform_3(%arg0: i32, %arg1: i32) -> (i32, i32) {
    %c0_i32 = arith.constant 0 : i32
    %c0_i32_0 = arith.constant 0 : i32
    %c0_i32_1 = arith.constant 0 : i32
    return %c0_i32, %c0_i32_0 : i32, i32
  }
  func.func @transform_4(%arg0: i32, %arg1: i32) -> (i32, i32) {
    %c0_i32 = arith.constant 0 : i32
    %c0_i32_0 = arith.constant 0 : i32
    return %arg0, %c0_i32 : i32, i32
  }
}

</mosaic_0001>

<bundles_post_ra>
// kernel: matmul_bn.1
= control target key start
LH: loop header
LB: loop body
LE: loop exit
PB: predicated region body
PF: predicated region fallthrough
CT: control target
= control target key end

     0   :  { %9 = vsyncpa [#allocation3], 0  ;;  %s524_s0 = inlined_call_operand.hbm [shape: bf16[48,128], index: 0, kind: input, shape index: {}]   ;;  %s525_s1 = inlined_call_operand.hbm [shape: bf16[128,128], index: 1, kind: input, shape index: {}]   ;;  %s526_s2 = inlined_call_operand.vmem [shape: f32[1,128], index: 2, kind: input, shape index: {}]   ;;  %s527_s3 = inlined_call_operand.vmem [shape: f32[1,128], index: 3, kind: input, shape index: {}]   ;;  %s528_s4 = inlined_call_operand.hbm [shape: f32[48,128], index: 4, kind: output, shape index: {}]  }
   0x1   :  { %10 = vsyncpa [#allocation6], 0 }
   0x2   :  { %11 = vsyncpa [#allocation4], 0  ;;  %s445_s15 = smov [#allocation2]   ;;  %s373_s19 = scalar_lea.hbm %s524_s0, 384 }
   0x3   :  { %s17_s16 = sshll.u32 %s445_s15, 4  ;;  %p374_p0 = scmp.ne.s32.totalorder %s524_s0, %s373_s19  ;;  %s18_s16 = int_to_ptr.vmem [resolvable:$true] %s17_s16 }
   0x4   :  { %p377_p1 = scmp.lt.u32.totalorder %s373_s19, %s524_s0 }
   0x6   :  { %p379_p2 = pnand %p377_p1, %p374_p0 }
   0x8   :  { %382 = shalt.err (!%p379_p2)
}
   0x9   :  { %s383_s24 = scalar_lea.vmem %s18_s16, 384  ;;  %p388_p4 = scmp.lt.s32.totalorder %s18_s16, %s18_s16 }
   0xa   :  { %p384_p3 = scmp.ne.s32.totalorder %s18_s16, %s383_s24  ;;  %p389_p5 = scmp.lt.s32.totalorder %s383_s24, %s383_s24 }
   0xc   :  { %p390_p6 = por %p389_p5, %p388_p4 }
   0xe   :  { %p391_p7 = pnand %p390_p6, %p384_p3 }
  0x10   :  { %394 = shalt.err (!%p391_p7)
}
  0x11   :  { %s446_s25 = smov 64   ;;  %s447_s26 = smov 4  }
  0x12   :  { %23 = dma.hbm_to_vmem [thread:$0]  %s524_s0, 384, %s18_s16, [#allocation3], %s446_s25, %s446_s25, %s447_s26  }
  0x13   :  { %s448_s29 = smov [#allocation5]   ;;  %s395_s7 = scalar_lea.hbm %s525_s1, 1024 }
  0x14   :  { %s29_s30 = sshll.u32 %s448_s29, 4  ;;  %p396_p8 = scmp.ne.s32.totalorder %s525_s1, %s395_s7  ;;  %s30_s30 = int_to_ptr.vmem [resolvable:$true] %s29_s30 }
  0x15   :  { %p399_p9 = scmp.lt.u32.totalorder %s395_s7, %s525_s1 }
  0x17   :  { %p401_p10 = pnand %p399_p9, %p396_p8 }
  0x19   :  { %404 = shalt.err (!%p401_p10)
}
  0x1a   :  { %s405_s12 = scalar_lea.vmem %s30_s30, 1024  ;;  %p410_p12 = scmp.lt.s32.totalorder %s30_s30, %s30_s30 }
  0x1b   :  { %p406_p11 = scmp.ne.s32.totalorder %s30_s30, %s405_s12  ;;  %p411_p13 = scmp.lt.s32.totalorder %s405_s12, %s405_s12 }
  0x1d   :  { %p412_p0 = por %p411_p13, %p410_p12 }
  0x1f   :  { %p413_p1 = pnand %p412_p0, %p406_p11 }
  0x21   :  { %416 = shalt.err (!%p413_p1)
}
  0x22   :  { %35 = dma.hbm_to_vmem [thread:$0]  %s525_s1, 1024, %s30_s30, [#allocation6], %s446_s25, %s446_s25, %s447_s26  }
  0x23   :  { %439 = dma.done.wait [#allocation3], 384  }
  0x24   :  { %440 = vsyncadd [#allocation3], 4294966912 }
  0x25   :  { %441 = dma.done.wait [#allocation6], 1024  }
  0x26   :  { %442 = vsyncadd [#allocation6], 4294966272  ;;  %v449_v0 = vmov 0.0   ;;  %vm450_vm0 = vmmov 0   ;;  %v362_v1 = vld [vmem:[#allocation5] sm:$0xff]   ;;  %v363_v2 = vld [vmem:[#allocation5 + $0x8] sm:$0xff]  }
  0x27   :  { %337 = vmatprep.subr.bf16.mxu1 %v449_v0  ;;  %309 = vmatprep.subr.bf16.mxu0 %v449_v0  ;;  %v364_v3 = vld [vmem:[#allocation5 + $0x10] sm:$0xff]   ;;  %v365_v4 = vld [vmem:[#allocation5 + $0x18] sm:$0xff]   ;;  %v366_v5 = vld [vmem:[#allocation5 + $0x20] sm:$0xff]  }
  0x28   :  { %329 = vmatprep.mubr.msk.bf16.mxu1 %vm450_vm0, %v449_v0  ;;  %325 = vmatprep.mubr.msk.bf16.mxu0 %vm450_vm0, %v449_v0  ;;  %v367_v6 = vld [vmem:[#allocation5 + $0x28] sm:$0xff]   ;;  %v368_v7 = vld [vmem:[#allocation5 + $0x30] sm:$0xff]   ;;  %v369_v8 = vld [vmem:[#allocation5 + $0x38] sm:$0xff]  }
  0x29   :  { %345 = vmatpush3.bf16.msra.mxu1 %v362_v1  ;;  %310 = vmatpush3.bf16.msra.mxu0 %v362_v1  ;;  %v370_v9 = vld [vmem:[#allocation2 + $0x8] sm:$0xff]   ;;  %v371_v10 = vld [vmem:[#allocation2] sm:$0xff]   ;;  %v372_v11 = vld [vmem:[#allocation2 + $0x10] sm:$0xff]  }
  0x2a   :  { %338 = vmatprep.subr.bf16.mxu1 %v449_v0  ;;  %311 = vmatprep.subr.bf16.mxu0 %v449_v0  ;;  %v296_v13 = vld [vmem:[%s526_s2] ss:$0 sm:$0xff]  ;;  %s451_s2 = smov [#allocation7]  }
  0x2b   :  { %v297_v17 = vld [vmem:[%s527_s3] ss:$0 sm:$0xff]  ;;  %s272_s3 = sshll.u32 %s451_s2, 4  ;;  %s273_s3 = int_to_ptr.vmem [resolvable:$true] %s272_s3 }
  0x2c   :  { %s417_s17 = scalar_lea.vmem %s273_s3, 768  ;;  %p422_p3 = scmp.lt.s32.totalorder %s273_s3, %s273_s3 }
  0x2d   :  { %346 = vmatpush3.bf16.msra.mxu1 %v363_v2  ;;  %312 = vmatpush3.bf16.msra.mxu0 %v363_v2  ;;  %p418_p2 = scmp.ne.s32.totalorder %s273_s3, %s417_s17  ;;  %p423_p4 = scmp.lt.s32.totalorder %s417_s17, %s417_s17 }
  0x2e   :  { %339 = vmatprep.subr.bf16.mxu1 %v449_v0  ;;  %313 = vmatprep.subr.bf16.mxu0 %v449_v0 }
  0x2f   :  { %p424_p5 = por %p423_p4, %p422_p3 }
  0x31   :  { %347 = vmatpush3.bf16.msra.mxu1 %v364_v3  ;;  %314 = vmatpush3.bf16.msra.mxu0 %v364_v3  ;;  %p425_p6 = pnand %p424_p5, %p418_p2 }
  0x32   :  { %340 = vmatprep.subr.bf16.mxu1 %v449_v0  ;;  %315 = vmatprep.subr.bf16.mxu0 %v449_v0 }
  0x35   :  { %348 = vmatpush3.bf16.msra.mxu1 %v365_v4  ;;  %316 = vmatpush3.bf16.msra.mxu0 %v365_v4 }
  0x36   :  { %341 = vmatprep.subr.bf16.mxu1 %v449_v0  ;;  %317 = vmatprep.subr.bf16.mxu0 %v449_v0 }
  0x39   :  { %349 = vmatpush3.bf16.msra.mxu1 %v366_v5  ;;  %318 = vmatpush3.bf16.msra.mxu0 %v366_v5 }
  0x3a   :  { %342 = vmatprep.subr.bf16.mxu1 %v449_v0  ;;  %319 = vmatprep.subr.bf16.mxu0 %v449_v0 }
  0x3d   :  { %350 = vmatpush3.bf16.msra.mxu1 %v367_v6  ;;  %320 = vmatpush3.bf16.msra.mxu0 %v367_v6 }
  0x3e   :  { %343 = vmatprep.subr.bf16.mxu1 %v449_v0  ;;  %321 = vmatprep.subr.bf16.mxu0 %v449_v0 }
  0x41   :  { %351 = vmatpush3.bf16.msra.mxu1 %v368_v7  ;;  %322 = vmatpush3.bf16.msra.mxu0 %v368_v7 }
  0x42   :  { %344 = vmatprep.subr.bf16.mxu1 %v449_v0  ;;  %323 = vmatprep.subr.bf16.mxu0 %v449_v0 }
  0x45   :  { %352 = vmatpush3.bf16.msra.mxu1 %v369_v8  ;;  %324 = vmatpush3.bf16.msra.mxu0 %v369_v8 }
  0x48   :  { %330 = vmatmul.mubr.bf16.vlgmr.msra.gmra.mrb[0].mxu1 %v370_v9  ;;  %326 = vmatmul.mubr.bf16.vlgmr.msra.gmra.mrb[0].mxu0 %v371_v10 }
  0x49   :  { %333 = vmatprep.mubr.msk.bf16.mxu1 %vm450_vm0, %v449_v0 }
  0x50   :  { %334 = vmatmul.mubr.bf16.gmra.mrb[4].mxu1 %v372_v11 }
 0x11b   :  { %v193_v12 = vpop.f32.mrb[0].mxu1  ;;  %v185_v14 = vpop.f32.mrb[0].mxu0 }
 0x11c   :  { %v331_v15 = vpop.f32.mrb[1].mxu1  ;;  %v327_v16 = vpop.f32.mrb[1].mxu0  ;;  %v238_v20 = vmul.f32 %v296_v13, %v193_v12  ;;  %v236_v22 = vmul.f32 %v296_v13, %v185_v14 }
 0x11d   :  { %v196_v18 = vpop.f32.mrb[2].mxu1  ;;  %v188_v19 = vpop.f32.mrb[2].mxu0 }
 0x11e   :  { %v332_v21 = vpop.f32.mrb[3].mxu1  ;;  %v328_v23 = vpop.f32.mrb[3].mxu0  ;;  %v251_v24 = vadd.f32 %v297_v17, %v238_v20  ;;  %v239_v25 = vmul.f32 %v296_v13, %v196_v18  ;;  %v249_v26 = vadd.f32 %v297_v17, %v236_v22  ;;  %v237_v27 = vmul.f32 %v296_v13, %v188_v19 }
 0x120   :  { %v257_v28 = vmax.f32 %v251_v24, 0.0  ;;  %v252_v29 = vadd.f32 %v297_v17, %v239_v25  ;;  %v255_v30 = vmax.f32 %v249_v26, 0.0  ;;  %v250_v31 = vadd.f32 %v297_v17, %v237_v27 }
 0x122   :  { %263 = vst [vmem:[#allocation7 + $0x10] sm:$0xff] %v257_v28  ;;  %v258_v33 = vmax.f32 %v252_v29, 0.0  ;;  %261 = vst [vmem:[#allocation7] sm:$0xff] %v255_v30  ;;  %v256_v34 = vmax.f32 %v250_v31, 0.0 }
 0x123   :  { %v201_v32 = vpop.f32.mrb[4].mxu1 }
 0x124   :  { %v335_v35 = vpop.f32.mrb[5].mxu1  ;;  %264 = vst [vmem:[#allocation7 + $0x18] sm:$0xff] %v258_v33  ;;  %262 = vst [vmem:[#allocation7 + $0x8] sm:$0xff] %v256_v34  ;;  %v240_v37 = vmul.f32 %v296_v13, %v201_v32 }
 0x125   :  { %v204_v36 = vpop.f32.mrb[6].mxu1 }
 0x126   :  { %v336_v38 = vpop.f32.mrb[7].mxu1  ;;  %v253_v39 = vadd.f32 %v297_v17, %v240_v37  ;;  %v241_v40 = vmul.f32 %v296_v13, %v204_v36 }
 0x128   :  { %v259_v41 = vmax.f32 %v253_v39, 0.0  ;;  %v254_v42 = vadd.f32 %v297_v17, %v241_v40 }
 0x12a   :  { %265 = vst [vmem:[#allocation7 + $0x20] sm:$0xff] %v259_v41  ;;  %v260_v43 = vmax.f32 %v254_v42, 0.0 }
 0x12c   :  { %266 = vst [vmem:[#allocation7 + $0x28] sm:$0xff] %v260_v43 }
 0x12d   :  { %428 = shalt.err (!%p425_p6)
}
 0x12e   :  { %s429_s20 = scalar_lea.hbm %s528_s4, 768 }
 0x12f   :  { %p430_p7 = scmp.ne.s32.totalorder %s528_s4, %s429_s20  ;;  %p433_p8 = scmp.lt.u32.totalorder %s429_s20, %s528_s4 }
 0x131   :  { %p435_p9 = pnand %p433_p8, %p430_p7 }
 0x133   :  { %438 = shalt.err (!%p435_p9)
}
 0x134   :  { %s452_s25 = smov 128   ;;  %s453_s26 = smov 8  }
 0x135   :  { %278 = dma.vmem_to_hbm [thread:$0]  %s273_s3, 768, %s528_s4, [#allocation4], %s452_s25, %s452_s25, %s453_s26  }
 0x136   :  { %443 = dma.done.wait [#allocation4], 768  }
 0x137   :  { %444 = vsyncadd [#allocation4], 4294966528 }
 0x138   :  { %282 = vsyncpa [#allocation3], 1 }
 0x139   :  { %283 = vsyncpa [#allocation6], 1 }
 0x13a   :  { %284 = vsyncpa [#allocation4], 1 }

</bundles_post_ra>
